<compile_context>
chip_gen: v6e
topology: v6e:2x2x1
jax: 0.10.0
libtpu: 0.0.40
codegen_flags: <defaults>
</compile_context>

<pallas_src>
import jax
import jax.numpy as jnp
from jax.experimental import pallas as pl
from jax.experimental.pallas import tpu as pltpu


def backward_input_update_kernel(
    x_ref, prop_ref,        # [tile_n, F] f32, [tile_n, E] f32
    w1_ref,                 # [F, H]     compute dtype (W1^T)
    wcomb_ref,              # [H+E, H]   compute dtype ([Wf ; Wc1e])
    b_hh_ref,               # [2, H]     f32  (row 0: b1, row 1: bf)
    wc2_ref,                # [H, E]     compute dtype (Wc2^T)
    bc2_ref,                # [1, E]     f32
    o_ref,                  # [tile_n, E] out dtype
):
    cdt = w1_ref.dtype      # MXU input dtype; accumulation is always f32
    H = w1_ref.shape[1]

    # linear_local_1 + relu  (input cast to MXU dtype in-kernel, f32 accumulate)
    h = jnp.dot(x_ref[...].astype(cdt), w1_ref[...],
                preferred_element_type=jnp.float32)
    h = jnp.maximum(h + b_hh_ref[0:1, :], 0.0)

    # fused: linear_local_2 -> concat -> linear_combine_1, then relu
    #   (h@W2^T + b2) @ Wc1h + prop @ Wc1e + bc1 == h @ Wf + prop @ Wc1e + bf
    # concat realized as a split matmul over static slices of the merged weight.
    y = (
        jnp.dot(h.astype(cdt), wcomb_ref[:H, :],
                preferred_element_type=jnp.float32)
        + jnp.dot(prop_ref[...].astype(cdt), wcomb_ref[H:, :],
                  preferred_element_type=jnp.float32)
        + b_hh_ref[1:2, :]
    )
    y = jnp.maximum(y, 0.0)

    # linear_combine_2 (unpadded E-wide store)
    out = jnp.dot(y.astype(cdt), wc2_ref[...], preferred_element_type=jnp.float32)
    o_ref[...] = (out + bc2_ref[...]).astype(o_ref.dtype)


def backward_input_update_nn(x, prop, params, *, tile_n=None,
                             compute_dtype=jnp.bfloat16,
                             out_dtype=jnp.float32):
    """x: [N, F] f32, prop: [N, E] f32 -> [N, E] out_dtype.

    tile_n=None auto-picks a row tile giving ~8 grid steps (>=4 per TensorCore
    on v7x), capped at 1024 rows.  compute_dtype=bf16 is the fast MXU path on
    v5e / v6e / v7x (f32 accumulation is preserved); pass jnp.float32 for tight
    numerical parity.  out_dtype=bf16 halves the dominant HBM writeback if the
    consumer tolerates it.
    """
    N, F = x.shape
    E = prop.shape[1]
    w1, b1, w2, b2, wc1, bc1, wc2, bc2 = params
    H = w1.shape[0]
    f32 = jnp.float32

    # ---- one-time (trace-time) weight prep -------------------------------
    w1_t = w1.T                                    # [F, H]
    wc1_t = wc1.T                                  # [H+E, H]
    wc1h = wc1_t[:H, :].astype(f32)                # hidden block    [H, H]
    wc1e = wc1_t[H:, :]                            # embedding block [E, H]

    # Fold linear_local_2 into the combine hidden block (no ReLU between them).
    wf = w2.T.astype(f32) @ wc1h                   # [H, H]
    bf = bc1.astype(f32) + b2.astype(f32) @ wc1h   # [H]

    cdt = compute_dtype
    w1_c = w1_t.astype(cdt)                                     # [F, H]
    wcomb_c = jnp.concatenate(
        [wf.astype(cdt), wc1e.astype(cdt)], axis=0)             # [H+E, H]
    wc2_c = wc2.T.astype(cdt)                                   # [H, E]
    b_hh = jnp.stack([b1.astype(f32), bf], axis=0)              # [2, H]
    bc2_2d = bc2.astype(f32).reshape(1, E)                      # [1, E]

    # ---- row-tile selection ----------------------------------------------
    if tile_n is None:
        t = pl.cdiv(N, 8)                 # aim for ~8 grid steps
        t = ((t + 7) // 8) * 8            # sublane-aligned
        tile_n = int(min(max(t, 8), 1024))

    grid = (pl.cdiv(N, tile_n),)
    row_spec = lambda cols: pl.BlockSpec((tile_n, cols), lambda i: (i, 0))
    full_spec = lambda r, c: pl.BlockSpec((r, c), lambda i: (0, 0))

    out = pl.pallas_call(
        backward_input_update_kernel,
        out_shape=jax.ShapeDtypeStruct((N, E), out_dtype),
        grid=grid,
        in_specs=[
            row_spec(F),              # x tile (f32, cast in kernel)
            row_spec(E),              # prop tile (f32, cast in kernel)
            full_spec(F, H),          # W1^T
            full_spec(H + E, H),      # [Wf ; Wc1e]
            full_spec(2, H),          # [b1 ; bf]
            full_spec(H, E),          # Wc2^T
            full_spec(1, E),          # bc2
        ],
        out_specs=row_spec(E),
        compiler_params=pltpu.CompilerParams(
            dimension_semantics=("parallel",),
            # VMEM use at these feature sizes is a few hundred KiB even at
            # tile_n=1024; if tile_n / F / H / E grow large in production, set
            # vmem_limit_bytes from 2*tile_n*(F+E)*4 + 2*tile_n*E*4 + weights
            # (v7x has only 64 MiB physical / 32 MiB default scoped VMEM).
        ),
    )(x, prop, w1_c, wcomb_c, b_hh, wc2_c, bc2_2d)

    return out


def _reference(x, prop, params):
    w1, b1, w2, b2, wc1, bc1, wc2, bc2 = params
    h = jax.nn.relu(x @ w1.T + b1)
    h = h @ w2.T + b2
    c = jnp.concatenate([h, prop], axis=-1)
    y = jax.nn.relu(c @ wc1.T + bc1)
    return y @ wc2.T + bc2


def _init_params(key, F, H, E):
    """Deterministic params mimicking nn.Linear shapes: weight [out, in], bias [out]."""
    ks = jax.random.split(key, 8)

    def lin(kw, kb, out_f, in_f):
        bound = 1.0 / jnp.sqrt(in_f)
        w = jax.random.uniform(kw, (out_f, in_f), jnp.float32, -bound, bound)
        b = jax.random.uniform(kb, (out_f,), jnp.float32, -bound, bound)
        return w, b

    w1, b1 = lin(ks[0], ks[1], H, F)          # linear_local_1
    w2, b2 = lin(ks[2], ks[3], H, H)          # linear_local_2
    wc1, bc1 = lin(ks[4], ks[5], H, H + E)    # linear_combine_1
    wc2, bc2 = lin(ks[6], ks[7], E, H)        # linear_combine_2
    return (w1, b1, w2, b2, wc1, bc1, wc2, bc2)


if __name__ == "__main__":
    # num_nodes, feature_vector, hidden_layer, embedding sizes
    N, F, H, E = 256, 16, 32, 32

    key = jax.random.PRNGKey(0)
    k_x, k_p, k_params = jax.random.split(key, 3)
    x = jax.random.normal(k_x, (N, F), jnp.float32)
    prop = jax.random.normal(k_p, (N, E), jnp.float32)
    params = _init_params(k_params, F, H, E)

    ref = _reference(x, prop, params)

    # f32 compute path: only the W2->Wc1 algebraic fold reassociates fp ops.
    out_f32 = backward_input_update_nn(x, prop, params, compute_dtype=jnp.float32)
    out_f32 = jax.block_until_ready(out_f32)
    assert out_f32.shape == (N, E)
    assert jnp.allclose(out_f32, ref, atol=1e-4, rtol=1e-4), "f32 mismatch vs reference"

    # bf16 MXU path with f32 accumulation (fast path on v5e/v6e/v7x); looser tolerance.
    out_bf16 = backward_input_update_nn(x, prop, params, compute_dtype=jnp.bfloat16)
    out_bf16 = jax.block_until_ready(out_bf16)
    assert out_bf16.shape == (N, E)
    assert jnp.allclose(out_bf16, ref, atol=5e-2, rtol=5e-2), "bf16 mismatch vs reference"

    print("KERNEL_OK")
</pallas_src>

<mosaic_0001>
module attributes {stable_mosaic.version = 11 : i64} {
  func.func @backward_input_update_kernel(%arg0: i32, %arg1: memref<32x16xf32, #tpu.memory_space<vmem>>, %arg2: memref<32x32xf32, #tpu.memory_space<vmem>>, %arg3: memref<16x32xf32, #tpu.memory_space<vmem>>, %arg4: memref<64x32xf32, #tpu.memory_space<vmem>>, %arg5: memref<2x32xf32, #tpu.memory_space<vmem>>, %arg6: memref<32x32xf32, #tpu.memory_space<vmem>>, %arg7: memref<1x32xf32, #tpu.memory_space<vmem>>, %arg8: memref<32x32xf32, #tpu.memory_space<vmem>>) attributes {dimension_semantics = [#tpu.dimension_semantics<parallel>], iteration_bounds = array<i64: 8>, scalar_prefetch = 0 : i64, scratch_operands = 0 : i64, tpu.core_type = #tpu.core_type<tc>, window_params = [{transform_indices = @transform_0, window_bounds = array<i64: 32, 16>}, {transform_indices = @transform_1, window_bounds = array<i64: 32, 32>}, {pipeline_mode = #tpu.pipeline_mode<synchronous>, transform_indices = @transform_2, window_bounds = array<i64: 16, 32>}, {pipeline_mode = #tpu.pipeline_mode<synchronous>, transform_indices = @transform_3, window_bounds = array<i64: 64, 32>}, {pipeline_mode = #tpu.pipeline_mode<synchronous>, transform_indices = @transform_4, window_bounds = array<i64: 2, 32>}, {pipeline_mode = #tpu.pipeline_mode<synchronous>, transform_indices = @transform_5, window_bounds = array<i64: 32, 32>}, {pipeline_mode = #tpu.pipeline_mode<synchronous>, transform_indices = @transform_6, window_bounds = array<i64: 1, 32>}, {transform_indices = @transform_7, window_bounds = array<i64: 32, 32>}]} {
    %c0 = arith.constant 0 : index
    %c0_0 = arith.constant 0 : index
    %0 = vector.load %arg1[%c0, %c0_0] : memref<32x16xf32, #tpu.memory_space<vmem>>, vector<32x16xf32>
    %c0_1 = arith.constant 0 : index
    %c0_2 = arith.constant 0 : index
    %1 = vector.load %arg3[%c0_1, %c0_2] : memref<16x32xf32, #tpu.memory_space<vmem>>, vector<16x32xf32>
    %cst = arith.constant dense<0.000000e+00> : vector<32x32xf32>
    %2 = tpu.matmul %0, %1, %cst {dimension_numbers = #tpu.dot_dimension_numbers<[1], [0], [0], [1], [0, 0, 1, 1], [], []>} : vector<32x16xf32>, vector<16x32xf32>, vector<32x32xf32> -> vector<32x32xf32>
    %c0_3 = arith.constant 0 : index
    %c0_4 = arith.constant 0 : index
    %3 = vector.load %arg5[%c0_3, %c0_4] : memref<2x32xf32, #tpu.memory_space<vmem>>, vector<1x32xf32>
    %4 = vector.broadcast %3 : vector<1x32xf32> to vector<32x32xf32>
    %5 = arith.addf %2, %4 : vector<32x32xf32>
    %cst_5 = arith.constant 0.000000e+00 : f32
    %6 = vector.broadcast %cst_5 : f32 to vector<32x32xf32>
    %7 = arith.maximumf %5, %6 : vector<32x32xf32>
    %c0_6 = arith.constant 0 : index
    %c0_7 = arith.constant 0 : index
    %8 = vector.load %arg4[%c0_6, %c0_7] : memref<64x32xf32, #tpu.memory_space<vmem>>, vector<32x32xf32>
    %cst_8 = arith.constant dense<0.000000e+00> : vector<32x32xf32>
    %9 = tpu.matmul %7, %8, %cst_8 {dimension_numbers = #tpu.dot_dimension_numbers<[1], [0], [0], [1], [0, 0, 1, 1], [], []>} : vector<32x32xf32>, vector<32x32xf32>, vector<32x32xf32> -> vector<32x32xf32>
    %c0_9 = arith.constant 0 : index
    %c0_10 = arith.constant 0 : index
    %10 = vector.load %arg2[%c0_9, %c0_10] : memref<32x32xf32, #tpu.memory_space<vmem>>, vector<32x32xf32>
    %c32 = arith.constant 32 : index
    %c0_11 = arith.constant 0 : index
    %11 = vector.load %arg4[%c32, %c0_11] : memref<64x32xf32, #tpu.memory_space<vmem>>, vector<32x32xf32>
    %cst_12 = arith.constant dense<0.000000e+00> : vector<32x32xf32>
    %12 = tpu.matmul %10, %11, %cst_12 {dimension_numbers = #tpu.dot_dimension_numbers<[1], [0], [0], [1], [0, 0, 1, 1], [], []>} : vector<32x32xf32>, vector<32x32xf32>, vector<32x32xf32> -> vector<32x32xf32>
    %13 = arith.addf %9, %12 : vector<32x32xf32>
    %c1 = arith.constant 1 : index
    %c0_13 = arith.constant 0 : index
    %14 = vector.load %arg5[%c1, %c0_13] : memref<2x32xf32, #tpu.memory_space<vmem>>, vector<1x32xf32>
    %15 = vector.broadcast %14 : vector<1x32xf32> to vector<32x32xf32>
    %16 = arith.addf %13, %15 : vector<32x32xf32>
    %cst_14 = arith.constant 0.000000e+00 : f32
    %17 = vector.broadcast %cst_14 : f32 to vector<32x32xf32>
    %18 = arith.maximumf %16, %17 : vector<32x32xf32>
    %c0_15 = arith.constant 0 : index
    %c0_16 = arith.constant 0 : index
    %19 = vector.load %arg6[%c0_15, %c0_16] : memref<32x32xf32, #tpu.memory_space<vmem>>, vector<32x32xf32>
    %cst_17 = arith.constant dense<0.000000e+00> : vector<32x32xf32>
    %20 = tpu.matmul %18, %19, %cst_17 {dimension_numbers = #tpu.dot_dimension_numbers<[1], [0], [0], [1], [0, 0, 1, 1], [], []>} : vector<32x32xf32>, vector<32x32xf32>, vector<32x32xf32> -> vector<32x32xf32>
    %c0_18 = arith.constant 0 : index
    %c0_19 = arith.constant 0 : index
    %21 = vector.load %arg7[%c0_18, %c0_19] : memref<1x32xf32, #tpu.memory_space<vmem>>, vector<1x32xf32>
    %22 = vector.broadcast %21 : vector<1x32xf32> to vector<32x32xf32>
    %23 = arith.addf %20, %22 : vector<32x32xf32>
    %c0_20 = arith.constant 0 : index
    %c0_21 = arith.constant 0 : index
    %24 = vector.load %arg8[%c0_20, %c0_21] : memref<32x32xf32, #tpu.memory_space<vmem>>, vector<32x32xf32>
    tpu.vector_store %arg8[%c0_20, %c0_21], %23 {strides = array<i32>} : memref<32x32xf32, #tpu.memory_space<vmem>>, vector<32x32xf32>,
    return
  }
  func.func @transform_0(%arg0: i32) -> (i32, i32) {
    %c0_i32 = arith.constant 0 : i32
    %c0_i32_0 = arith.constant 0 : i32
    return %arg0, %c0_i32 : i32, i32
  }
  func.func @transform_1(%arg0: i32) -> (i32, i32) {
    %c0_i32 = arith.constant 0 : i32
    %c0_i32_0 = arith.constant 0 : i32
    return %arg0, %c0_i32 : i32, i32
  }
  func.func @transform_2(%arg0: i32) -> (i32, i32) {
    %c0_i32 = arith.constant 0 : i32
    %c0_i32_0 = arith.constant 0 : i32
    %c0_i32_1 = arith.constant 0 : i32
    return %c0_i32, %c0_i32_0 : i32, i32
  }
  func.func @transform_3(%arg0: i32) -> (i32, i32) {
    %c0_i32 = arith.constant 0 : i32
    %c0_i32_0 = arith.constant 0 : i32
    %c0_i32_1 = arith.constant 0 : i32
    return %c0_i32, %c0_i32_0 : i32, i32
  }
  func.func @transform_4(%arg0: i32) -> (i32, i32) {
    %c0_i32 = arith.constant 0 : i32
    %c0_i32_0 = arith.constant 0 : i32
    %c0_i32_1 = arith.constant 0 : i32
    return %c0_i32, %c0_i32_0 : i32, i32
  }
  func.func @transform_5(%arg0: i32) -> (i32, i32) {
    %c0_i32 = arith.constant 0 : i32
    %c0_i32_0 = arith.constant 0 : i32
    %c0_i32_1 = arith.constant 0 : i32
    return %c0_i32, %c0_i32_0 : i32, i32
  }
  func.func @transform_6(%arg0: i32) -> (i32, i32) {
    %c0_i32 = arith.constant 0 : i32
    %c0_i32_0 = arith.constant 0 : i32
    %c0_i32_1 = arith.constant 0 : i32
    return %c0_i32, %c0_i32_0 : i32, i32
  }
  func.func @transform_7(%arg0: i32) -> (i32, i32) {
    %c0_i32 = arith.constant 0 : i32
    %c0_i32_0 = arith.constant 0 : i32
    return %arg0, %c0_i32 : i32, i32
  }
}

</mosaic_0001>

<bundles_post_ra>
// kernel: tpu_custom_call.1
= control target key start
LH: loop header
LB: loop body
LE: loop exit
PB: predicated region body
PF: predicated region fallthrough
CT: control target
= control target key end

     0   :  { %s987_s24 = smov 0   ;;  %s1079_s0 = inlined_call_operand.vmem [shape: f32[256,16], index: 0, kind: input, shape index: {}]   ;;  %s1080_s1 = inlined_call_operand.vmem [shape: f32[256,32], index: 1, kind: input, shape index: {}]   ;;  %s1081_s2 = inlined_call_operand.vmem [shape: f32[16,32], index: 2, kind: input, shape index: {}]   ;;  %s1082_s3 = inlined_call_operand.vmem [shape: f32[64,32], index: 3, kind: input, shape index: {}]   ;;  %s1083_s4 = inlined_call_operand.vmem [shape: f32[2,32], index: 4, kind: input, shape index: {}]   ;;  %s1084_s5 = inlined_call_operand.vmem [shape: f32[32,32], index: 5, kind: input, shape index: {}]   ;;  %s1085_s6 = inlined_call_operand.vmem [shape: f32[1,32], index: 6, kind: input, shape index: {}]   ;;  %s1086_s7 = inlined_call_operand.vmem [shape: f32[256,32], index: 7, kind: output, shape index: {}]  }
   0x1 LB: > { %s817_s25 = sadd.s32 4294967295, %s945_s24   ;;  %p821_p0 = scmp.ge.s32.totalorder %s945_s24, 1  ;;  %s945_s24 = sphi %s987_s24, %s17_s24  }
   0x2   : > { %p249_p1 = scmp.lt.s32.totalorder %s945_s24, 9 }
   0x4   : > { %p250_p2 = pnand %p821_p0, %p249_p1 }
   0x5   : > { %s822_s30 = sshll.u32 (!%p250_p2), %s817_s25, 2 }
   0x6   : > { %253 = sbr.rel (%p250_p2) target bundleno = 620 (0x26c), region = 48  ;;  %p287_p3 = scmp.lt.s32.totalorder (!%p250_p2), %s822_s30, 31 }
   0xb   : > { %v309_v0 = vld [vmem:[%s1081_s2 + $0x8] sm:$0xff]  ;;  %v308_v1 = vld [vmem:[%s1081_s2] sm:$0xff]  ;;  %v428_v2 = vld [vmem:[%s1082_s3 + $0x38] sm:$0xff]  ;;  %s1088_s30 = smov (!%p287_p3, %s822_s30), 31  ;;  %vm315_vm0 = vcmask 130048   ;;  %vm429_vm1 = vcmask 261120  }
   0xc   : > { %879 = vmatprep.subr.mxu0 %v309_v0  ;;  %889 = vmatprep.subr.mxu1 %v428_v2  ;;  %v420_v3 = vld [vmem:[%s1082_s3 + $0x18] sm:$0xff]  ;;  %s1007_s12 = sshll.u32 %s1088_s30, 3  ;;  %v427_v8 = vld [vmem:[%s1082_s3 + $0x30] sm:$0xff]  ;;  %v426_v10 = vld [vmem:[%s1082_s3 + $0x28] sm:$0xff] }
   0xd   : > { %880 = vmatpush3.msra.mxu0 %v309_v0  ;;  %890 = vmatpush3.msra.mxu1 %v428_v2  ;;  %s290_s15 = scalar_lea.vmem %s1079_s0, %s1007_s12  ;;  %v419_v9 = vld [vmem:[%s1082_s3 + $0x10] sm:$0xff]  ;;  %v418_v11 = vld [vmem:[%s1082_s3 + $0x8] sm:$0xff]  ;;  %v425_v12 = vld [vmem:[%s1082_s3 + $0x20] sm:$0xff]  ;;  %s296_s29 = scalar_lea.vmem %s1080_s1, %s1007_s12 }
   0xe   : > { %881 = vmatprep.subr.mxu0 %v308_v1  ;;  %v304_v4 = vld [vmem:[%s290_s15] sm:$0xff]  ;;  %v305_v5 = vld [vmem:[%s290_s15 + $0x8] sm:$0xff]  ;;  %v306_v6 = vld [vmem:[%s290_s15 + $0x10] sm:$0xff]  ;;  %891 = vmatprep.subr.mxu1 %v427_v8  ;;  %s302_s27 = scalar_lea.vmem %s1086_s7, %s1007_s12 }
   0xf   : > { %882 = vmatpush3.msra.mxu0 %v308_v1  ;;  %883 = vmatprep.mubr.msk.f32.mxu0 %vm315_vm0, %v304_v4  ;;  %v307_v7 = vld [vmem:[%s290_s15 + $0x18] sm:$0xff]  ;;  %v421_v13 = vld [vmem:[%s296_s29] sm:$0xff]  ;;  %v422_v15 = vld [vmem:[%s296_s29 + $0x8] sm:$0xff] }
  0x10   : > { %903 = vmatprep.subr.mxu0 %v420_v3  ;;  %884 = vmatmul.mubr.msk.f32.vlgmr.msra.gmra.mxu0 %vm315_vm0, %v305_v5  ;;  %v417_v14 = vld [vmem:[%s1082_s3] sm:$0xff]  ;;  %v423_v16 = vld [vmem:[%s296_s29 + $0x10] sm:$0xff]  ;;  %v424_v17 = vld [vmem:[%s296_s29 + $0x18] sm:$0xff] }
  0x11   : > { %886 = vmatprep.mubr.msk.f32.mxu0 %vm315_vm0, %v306_v6  ;;  %904 = vmatpush3.msra.mxu0 %v420_v3  ;;  %v828_v18 = vld [vmem:[%s1083_s4] ss:$0 sm:$0xff]  ;;  %v640_v31 = vld [vmem:[%s1084_s5 + $0x18] sm:$0xff]  ;;  %v639_v32 = vld [vmem:[%s1084_s5 + $0x10] sm:$0xff] }
  0x12   : > { %892 = vmatpush3.msra.mxu1 %v427_v8  ;;  %905 = vmatprep.subr.mxu0 %v419_v9  ;;  %v638_v33 = vld [vmem:[%s1084_s5 + $0x8] sm:$0xff]  ;;  %v637_v34 = vld [vmem:[%s1084_s5] sm:$0xff] }
  0x13   : > { %893 = vmatprep.subr.mxu1 %v426_v10  ;;  %906 = vmatpush3.msra.mxu0 %v419_v9  ;;  %v841_v39 = vld [vmem:[%s1083_s4 + $0x1] ss:$0 sm:$0xff]  ;;  %v842_v56 = vld [vmem:[%s1085_s6] ss:$0 sm:$0xff] }
  0x14   : > { %887 = vmatmul.mubr.msk.f32.gmra.mxu0 %vm315_vm0, %v307_v7  ;;  %894 = vmatpush3.msra.mxu1 %v426_v10 }
  0x15   : > { %907 = vmatprep.subr.mxu0 %v418_v11  ;;  %895 = vmatprep.subr.mxu1 %v425_v12 }
  0x16   : > { %908 = vmatpush3.msra.mxu0 %v418_v11  ;;  %896 = vmatpush3.msra.mxu1 %v425_v12 }
  0x17   : > { %897 = vmatprep.mubr.msk.f32.mxu1 %vm429_vm1, %v421_v13  ;;  %909 = vmatprep.subr.mxu0 %v417_v14 }
  0x18   : > { %898 = vmatmul.mubr.msk.f32.vlgmr.msra.gmra.mxu1 %vm429_vm1, %v422_v15  ;;  %910 = vmatpush3.msra.mxu0 %v417_v14 }
  0x19   : > { %900 = vmatprep.mubr.msk.f32.mxu1 %vm429_vm1, %v423_v16  ;;  %917 = vmatprep.subr.mxu1 %v640_v31 }
  0x1a   : > { %918 = vmatpush3.msra.mxu1 %v640_v31 }
  0x1b   : > { %919 = vmatprep.subr.mxu1 %v639_v32 }
  0x1c   : > { %901 = vmatmul.mubr.msk.f32.gmra.mxu1 %vm429_vm1, %v424_v17 }
  0x1d   : > { %920 = vmatpush3.msra.mxu1 %v639_v32 }
  0x1e   : > { %921 = vmatprep.subr.mxu1 %v638_v33 }
  0x1f   : > { %922 = vmatpush3.msra.mxu1 %v638_v33 }
  0x20   : > { %923 = vmatprep.subr.mxu1 %v637_v34 }
  0x21   : > { %924 = vmatpush3.msra.mxu1 %v637_v34 }
  0xd0   : > { %v885_v19 = vpop.f32.mrf.mxu0 }
  0xd1   : > { %v400_v20 = vadd.f32 %v885_v19, %v828_v18 }
  0xd2   : > { %v394_v21 = vpop.f32.mrf.mxu0 }
  0xd3   : > { %v395_v22 = vadd.f32 %v828_v18, %v394_v21  ;;  %v414_v25 = vmax.f32 %v400_v20, 0.0 }
  0xd4   : > { %v888_v23 = vpop.f32.mrf.mxu0 }
  0xd5   : > { %v413_v24 = vmax.f32 %v395_v22, 0.0  ;;  %v410_v26 = vadd.f32 %v888_v23, %v828_v18 }
  0xd6   : > { %v404_v27 = vpop.f32.mrf.mxu0 }
  0xd7   : > { %v405_v28 = vadd.f32 %v828_v18, %v404_v27  ;;  %911 = vmatprep.mubr.msk.f32.mxu0 %vm429_vm1, %v413_v24  ;;  %v416_v30 = vmax.f32 %v410_v26, 0.0 }
  0xd8   : > { %912 = vmatmul.mubr.msk.f32.vlgmr.msra.gmra.mxu0 %vm429_vm1, %v414_v25  ;;  %v899_v35 = vpop.f32.mrf.mxu1 }
  0xd9   : > { %v415_v29 = vmax.f32 %v405_v28, 0.0 }
  0xda   : > { %v508_v36 = vpop.f32.mrf.mxu1 }
  0xdb   : > { %914 = vmatprep.mubr.msk.f32.mxu0 %vm429_vm1, %v415_v29 }
  0xdc   : > { %915 = vmatmul.mubr.msk.f32.gmra.mxu0 %vm429_vm1, %v416_v30  ;;  %v902_v40 = vpop.f32.mrf.mxu1 }
  0xde   : > { %v518_v47 = vpop.f32.mrf.mxu1 }
 0x198   : > { %v913_v37 = vpop.f32.mrf.mxu0 }
 0x199   : > { %v611_v38 = vadd.f32 %v913_v37, %v899_v35 }
 0x19a   : > { %v605_v41 = vpop.f32.mrf.mxu0 }
 0x19b   : > { %v606_v42 = vadd.f32 %v605_v41, %v508_v36  ;;  %v630_v43 = vadd.f32 %v841_v39, %v611_v38 }
 0x19c   : > { %v916_v44 = vpop.f32.mrf.mxu0 }
 0x19d   : > { %v629_v45 = vadd.f32 %v841_v39, %v606_v42  ;;  %v621_v46 = vadd.f32 %v916_v44, %v902_v40  ;;  %v634_v51 = vmax.f32 %v630_v43, 0.0 }
 0x19e   : > { %v615_v48 = vpop.f32.mrf.mxu0 }
 0x19f   : > { %v633_v49 = vmax.f32 %v629_v45, 0.0  ;;  %v616_v50 = vadd.f32 %v615_v48, %v518_v47  ;;  %v632_v52 = vadd.f32 %v841_v39, %v621_v46 }
 0x1a1   : > { %v631_v53 = vadd.f32 %v841_v39, %v616_v50  ;;  %925 = vmatprep.mubr.msk.f32.mxu1 %vm429_vm1, %v633_v49  ;;  %v636_v55 = vmax.f32 %v632_v52, 0.0 }
 0x1a2   : > { %926 = vmatmul.mubr.msk.f32.vlgmr.msra.gmra.mxu1 %vm429_vm1, %v634_v51 }
 0x1a3   : > { %v635_v54 = vmax.f32 %v631_v53, 0.0 }
 0x1a5   : > { %928 = vmatprep.mubr.msk.f32.mxu1 %vm429_vm1, %v635_v54 }
 0x1a6   : > { %929 = vmatmul.mubr.msk.f32.gmra.mxu1 %vm429_vm1, %v636_v55 }
 0x262   : > { %v927_v57 = vpop.f32.mrf.mxu1 }
 0x263   : > { %v732_v58 = vadd.f32 %v927_v57, %v842_v56 }
 0x264   : > { %v726_v59 = vpop.f32.mrf.mxu1 }
 0x265   : > { %746 = vst.msk [vmem:[%s302_s27 + $0x8] sm:$0xff] %vm429_vm1, %v732_v58  ;;  %v727_v60 = vadd.f32 %v842_v56, %v726_v59 }
 0x266   : > { %v930_v61 = vpop.f32.mrf.mxu1 }
 0x267   : > { %745 = vst.msk [vmem:[%s302_s27] sm:$0xff] %vm429_vm1, %v727_v60  ;;  %v742_v62 = vadd.f32 %v930_v61, %v842_v56 }
 0x268   : > { %v736_v63 = vpop.f32.mrf.mxu1 }
 0x269   : > { %748 = vst.msk [vmem:[%s302_s27 + $0x18] sm:$0xff] %vm429_vm1, %v742_v62  ;;  %v737_v0 = vadd.f32 %v842_v56, %v736_v63 }
 0x26b   : > { %747 = vst.msk [vmem:[%s302_s27 + $0x10] sm:$0xff] %vm429_vm1, %v737_v0 }
 0x26c PF: > { %s17_s24 = sadd.s32 1, %s945_s24  }
 0x26d   : > { %p14_p4 = scmp.ge.s32.totalorder %s17_s24, 10  }
 0x26f   :  { %16 = sbr.rel (!%p14_p4) target bundleno = 1 (0x1), region = 81 }

</bundles_post_ra>
